<compile_context>
chip_gen: v7x
topology: tpu7x:2x2x1
jax: 0.10.0
libtpu: 0.0.40
codegen_flags: <defaults>
</compile_context>

<pallas_src>
import functools

import jax
import jax.numpy as jnp
from jax.experimental import pallas as pl
from jax.experimental.pallas import tpu as pltpu

N, C, H, W = 2, 4, 16, 16
SAMPLING_TIMES = 2          # InputProjectionA(2): 16x16 -> 8x8 -> 4x4


def _pool_matrix(n_in, n_out):
    """(n_in, n_out) 0/1 matrix: output index i sums inputs {2i-1, 2i, 2i+1}
    that lie in range (zero padding), i.e. one AvgPool(3, stride=2, pad=1)
    step along a single axis, without the divisor."""
    k = jnp.arange(n_in, dtype=jnp.int32)[:, None]
    i = jnp.arange(n_out, dtype=jnp.int32)[None, :]
    return (jnp.abs(k - 2 * i) <= 1).astype(jnp.float32)


def _composed_pool_operator(h, w, times):
    """Compose `times` separable pooling steps into a single (h*w, hf*wf)
    operator with the full (1/9)^times divisor folded in."""
    s_h = None
    s_w = None
    hh, ww = h, w
    for _ in range(times):
        ho = (hh - 1) // 2 + 1
        wo = (ww - 1) // 2 + 1
        p_h = _pool_matrix(hh, ho)
        p_w = _pool_matrix(ww, wo)
        s_h = p_h if s_h is None else s_h @ p_h        # (h, hf)
        s_w = p_w if s_w is None else s_w @ p_w        # (w, wf)
        hh, ww = ho, wo
    # kron(S_h, S_w)[k*w + l, i*wf + j] = S_h[k, i] * S_w[l, j]
    m = jnp.kron(s_h, s_w) * jnp.float32((1.0 / 9.0) ** times)
    return m, hh, ww


def _proj_kernel(x_ref, m_ref, o_ref):
    """out = x_flat @ M : one lane-dense MXU contraction, scale pre-folded."""
    o_ref[...] = jnp.dot(
        x_ref[...], m_ref[...], preferred_element_type=jnp.float32
    ).astype(o_ref.dtype)


@functools.partial(jax.jit, static_argnames=("sampling_times",))
def input_projection_a_forward(img, sampling_times=SAMPLING_TIMES):
    """Pallas equivalent of InputProjectionA(sampling_times).forward(img), NCHW."""
    n, c, h, w = img.shape
    if sampling_times == 0:
        return img

    batch = n * c
    m, hf, wf = _composed_pool_operator(h, w, sampling_times)   # (h*w, hf*wf)

    x_flat = img.reshape(batch, h * w).astype(jnp.float32)      # pure view, lane-dense

    out = pl.pallas_call(
        _proj_kernel,
        out_shape=jax.ShapeDtypeStruct((batch, hf * wf), jnp.float32),
        grid_spec=pltpu.PrefetchScalarGridSpec(
            num_scalar_prefetch=0,
            grid=(1,),                                   # whole problem in one block
            in_specs=[
                pl.BlockSpec((batch, h * w), lambda i: (0, 0)),       # (8, 256)
                pl.BlockSpec((h * w, hf * wf), lambda i: (0, 0)),     # (256, 16)
            ],
            out_specs=pl.BlockSpec((batch, hf * wf), lambda i: (0, 0)),  # (8, 16)
        ),
        compiler_params=pltpu.CompilerParams(
            dimension_semantics=("arbitrary",)),
    )(x_flat, m)

    return out.reshape(n, c, hf, wf).astype(img.dtype)


def _reference(img, sampling_times):
    """Pure-JAX (non-Pallas) reference: repeated AvgPool2d(3, stride=2, padding=1)."""
    x = img.astype(jnp.float32)
    for _ in range(sampling_times):
        s = jax.lax.reduce_window(
            x, jnp.float32(0), jax.lax.add,
            window_dimensions=(1, 1, 3, 3),
            window_strides=(1, 1, 2, 2),
            padding=((0, 0), (0, 0), (1, 1), (1, 1)))
        x = s / 9.0
    return x


if __name__ == "__main__":
    key = jax.random.PRNGKey(0)
    # InputProjectionA.forward(input): input RGB-like image, NCHW float32.
    img = jax.random.normal(key, (N, C, H, W), dtype=jnp.float32)

    out = input_projection_a_forward(img, sampling_times=SAMPLING_TIMES)
    jax.block_until_ready(out)

    ref = _reference(img, SAMPLING_TIMES)
    assert out.shape == ref.shape, (out.shape, ref.shape)
    assert bool(jnp.allclose(out, ref, atol=1e-5, rtol=1e-5)), "mismatch vs reference"

    print("KERNEL_OK")
</pallas_src>

<mosaic_0001>
module attributes {stable_mosaic.version = 11 : i64} {
  func.func @_proj_kernel(%arg0: i32, %arg1: memref<8x256xf32, #tpu.memory_space<vmem>>, %arg2: memref<256x16xf32, #tpu.memory_space<vmem>>, %arg3: memref<8x16xf32, #tpu.memory_space<vmem>>) attributes {dimension_semantics = [#tpu.dimension_semantics<arbitrary>], iteration_bounds = array<i64: 1>, scalar_prefetch = 0 : i64, scratch_operands = 0 : i64, tpu.core_type = #tpu.core_type<tc>, window_params = [{pipeline_mode = #tpu.pipeline_mode<synchronous>, transform_indices = @transform_0, window_bounds = array<i64: 8, 256>}, {pipeline_mode = #tpu.pipeline_mode<synchronous>, transform_indices = @transform_1, window_bounds = array<i64: 256, 16>}, {pipeline_mode = #tpu.pipeline_mode<synchronous>, transform_indices = @transform_2, window_bounds = array<i64: 8, 16>}]} {
    %c0 = arith.constant 0 : index
    %c0_0 = arith.constant 0 : index
    %0 = vector.load %arg1[%c0, %c0_0] : memref<8x256xf32, #tpu.memory_space<vmem>>, vector<8x256xf32>
    %c0_1 = arith.constant 0 : index
    %c0_2 = arith.constant 0 : index
    %1 = vector.load %arg2[%c0_1, %c0_2] : memref<256x16xf32, #tpu.memory_space<vmem>>, vector<256x16xf32>
    %cst = arith.constant dense<0.000000e+00> : vector<8x16xf32>
    %2 = tpu.matmul %0, %1, %cst {dimension_numbers = #tpu.dot_dimension_numbers<[1], [0], [0], [1], [0, 0, 1, 1], [], []>} : vector<8x256xf32>, vector<256x16xf32>, vector<8x16xf32> -> vector<8x16xf32>
    %c0_3 = arith.constant 0 : index
    %c0_4 = arith.constant 0 : index
    %3 = vector.load %arg3[%c0_3, %c0_4] : memref<8x16xf32, #tpu.memory_space<vmem>>, vector<8x16xf32>
    tpu.vector_store %arg3[%c0_3, %c0_4], %2 {strides = array<i32>} : memref<8x16xf32, #tpu.memory_space<vmem>>, vector<8x16xf32>,
    return
  }
  func.func @transform_0(%arg0: i32) -> (i32, i32) {
    %c0_i32 = arith.constant 0 : i32
    %c0_i32_0 = arith.constant 0 : i32
    %c0_i32_1 = arith.constant 0 : i32
    return %c0_i32, %c0_i32_0 : i32, i32
  }
  func.func @transform_1(%arg0: i32) -> (i32, i32) {
    %c0_i32 = arith.constant 0 : i32
    %c0_i32_0 = arith.constant 0 : i32
    %c0_i32_1 = arith.constant 0 : i32
    return %c0_i32, %c0_i32_0 : i32, i32
  }
  func.func @transform_2(%arg0: i32) -> (i32, i32) {
    %c0_i32 = arith.constant 0 : i32
    %c0_i32_0 = arith.constant 0 : i32
    %c0_i32_1 = arith.constant 0 : i32
    return %c0_i32, %c0_i32_0 : i32, i32
  }
}

</mosaic_0001>

<bundles_post_ra>
// kernel: input_projection_a_forward.1
= control target key start
LH: loop header
LB: loop body
LE: loop exit
PB: predicated region body
PF: predicated region fallthrough
CT: control target
= control target key end

     0   :  { %vm115_vm0 = vcmask 130048   ;;  %s308_s1 = inlined_call_operand.vmem [shape: f32[256,16], index: 1, kind: input, shape index: {}]   ;;  %s309_s0 = inlined_call_operand.vmem [shape: f32[8,256], index: 0, kind: input, shape index: {}]   ;;  %s310_s2 = inlined_call_operand.vmem [shape: f32[8,16], index: 2, kind: output, shape index: {}]  }
   0x1   :  { %v29_v0 = vld [vmem:[%s308_s1 + $0x80] sm:$0xff]  ;;  %v30_v1 = vld [vmem:[%s308_s1 + $0x88] sm:$0xff]  ;;  %v31_v5 = vld [vmem:[%s308_s1 + $0x90] sm:$0xff] }
   0x2   :  { %v13_v2 = vld [vmem:[%s308_s1] sm:$0xff]  ;;  %v156_v3 = vpack.c.bf16 %v30_v1, %v29_v0  ;;  %v14_v4 = vld [vmem:[%s308_s1 + $0x8] sm:$0xff]  ;;  %v32_v6 = vld [vmem:[%s308_s1 + $0x98] sm:$0xff] }
   0x3   :  { %v158_v7 = vpack.c.bf16 %v14_v4, %v13_v2  ;;  %v160_v8 = vpack.c.bf16 %v32_v6, %v31_v5  ;;  %v15_v9 = vld [vmem:[%s308_s1 + $0x10] sm:$0xff]  ;;  %v16_v10 = vld [vmem:[%s308_s1 + $0x18] sm:$0xff]  ;;  %v33_v11 = vld [vmem:[%s308_s1 + $0xa0] sm:$0xff] }
   0x4   :  { %157 = vmatprep.subr.bf16.mxu0 %v156_v3  ;;  %v34_v12 = vld [vmem:[%s308_s1 + $0xa8] sm:$0xff]  ;;  %v162_v13 = vpack.c.bf16 %v16_v10, %v15_v9  ;;  %v17_v15 = vld [vmem:[%s308_s1 + $0x20] sm:$0xff]  ;;  %v35_v17 = vld [vmem:[%s308_s1 + $0xb0] sm:$0xff] }
   0x5   :  { %159 = vmatpush3.bf16.msra.mxu0 %v158_v7  ;;  %v164_v14 = vpack.c.bf16 %v34_v12, %v33_v11  ;;  %v18_v16 = vld [vmem:[%s308_s1 + $0x28] sm:$0xff]  ;;  %v36_v18 = vld [vmem:[%s308_s1 + $0xb8] sm:$0xff]  ;;  %v19_v21 = vld [vmem:[%s308_s1 + $0x30] sm:$0xff] }
   0x6   :  { %161 = vmatprep.subr.bf16.mxu0 %v160_v8  ;;  %v166_v19 = vpack.c.bf16 %v18_v16, %v17_v15  ;;  %v168_v20 = vpack.c.bf16 %v36_v18, %v35_v17  ;;  %v20_v22 = vld [vmem:[%s308_s1 + $0x38] sm:$0xff]  ;;  %v37_v23 = vld [vmem:[%s308_s1 + $0xc0] sm:$0xff]  ;;  %v38_v24 = vld [vmem:[%s308_s1 + $0xc8] sm:$0xff] }
   0x7   :  { %v12_v25 = vld [vmem:[%s309_s0 + $0x8] sm:$0xff]  ;;  %v170_v26 = vpack.c.bf16 %v20_v22, %v19_v21  ;;  %v172_v27 = vpack.c.bf16 %v38_v24, %v37_v23  ;;  %v21_v28 = vld [vmem:[%s308_s1 + $0x40] sm:$0xff]  ;;  %v39_v30 = vld [vmem:[%s308_s1 + $0xd0] sm:$0xff] }
   0x8   :  { %109 = vmatprep.mubr.f32.mxu0 %v12_v25  ;;  %v22_v29 = vld [vmem:[%s308_s1 + $0x48] sm:$0xff]  ;;  %v40_v31 = vld [vmem:[%s308_s1 + $0xd8] sm:$0xff]  ;;  %v23_v34 = vld [vmem:[%s308_s1 + $0x50] sm:$0xff] }
   0x9   :  { %163 = vmatpush3.bf16.msra.mxu0 %v162_v13  ;;  %v174_v32 = vpack.c.bf16 %v22_v29, %v21_v28  ;;  %v176_v33 = vpack.c.bf16 %v40_v31, %v39_v30  ;;  %v24_v35 = vld [vmem:[%s308_s1 + $0x58] sm:$0xff]  ;;  %v41_v36 = vld [vmem:[%s308_s1 + $0xe0] sm:$0xff]  ;;  %v42_v37 = vld [vmem:[%s308_s1 + $0xe8] sm:$0xff] }
   0xa   :  { %165 = vmatprep.subr.bf16.mxu0 %v164_v14  ;;  %v178_v38 = vpack.c.bf16 %v24_v35, %v23_v34  ;;  %v180_v39 = vpack.c.bf16 %v42_v37, %v41_v36  ;;  %v25_v40 = vld [vmem:[%s308_s1 + $0x60] sm:$0xff]  ;;  %v26_v41 = vld [vmem:[%s308_s1 + $0x68] sm:$0xff]  ;;  %v43_v42 = vld [vmem:[%s308_s1 + $0xf0] sm:$0xff] }
   0xb   :  { %v44_v43 = vld [vmem:[%s308_s1 + $0xf8] sm:$0xff]  ;;  %v182_v44 = vpack.c.bf16 %v26_v41, %v25_v40  ;;  %v27_v46 = vld [vmem:[%s308_s1 + $0x70] sm:$0xff]  ;;  %v11_v49 = vld [vmem:[%s309_s0] sm:$0xff] }
   0xc   :  { %v184_v45 = vpack.c.bf16 %v44_v43, %v43_v42  ;;  %v28_v47 = vld [vmem:[%s308_s1 + $0x78] sm:$0xff] }
   0xd   :  { %167 = vmatpush3.bf16.msra.mxu0 %v166_v19  ;;  %v186_v48 = vpack.c.bf16 %v28_v47, %v27_v46 }
   0xe   :  { %169 = vmatprep.subr.bf16.mxu0 %v168_v20 }
  0x11   :  { %171 = vmatpush3.bf16.msra.mxu0 %v170_v26 }
  0x12   :  { %173 = vmatprep.subr.bf16.mxu0 %v172_v27 }
  0x15   :  { %175 = vmatpush3.bf16.msra.mxu0 %v174_v32 }
  0x16   :  { %177 = vmatprep.subr.bf16.mxu0 %v176_v33 }
  0x19   :  { %179 = vmatpush3.bf16.msra.mxu0 %v178_v38 }
  0x1a   :  { %181 = vmatprep.subr.bf16.mxu0 %v180_v39 }
  0x1d   :  { %183 = vmatpush3.bf16.msra.mxu0 %v182_v44 }
  0x1e   :  { %185 = vmatprep.subr.bf16.mxu0 %v184_v45 }
  0x21   :  { %187 = vmatpush3.bf16.msra.mxu0 %v186_v48 }
  0x24   :  { %110 = vmatmul.mubr.f32.vlgmr.msra.gmra.mrb[0].mxu0 %v11_v49 }
  0xf7   :  { %v153_v50 = vpop.f32.mrb[0].mxu0 }
  0xf8   :  { %v154_v51 = vpop.f32.mrb[1].mxu0 }
  0xf9   :  { %v155_v52 = vadd.f32 %v154_v51, %v153_v50 }
  0xfb   :  { %116 = vst.msk [vmem:[%s310_s2] sm:$0xff] %vm115_vm0, %v155_v52 }

</bundles_post_ra>
